<compile_context>
chip_gen: v7x
topology: tpu7x:2x2x1
jax: 0.10.0
libtpu: 0.0.40
codegen_flags: <defaults>
</compile_context>

<pallas_src>
import functools

import jax
import jax.numpy as jnp
from jax.experimental import pallas as pl
from jax.experimental.pallas import tpu as pltpu

LANE = 128


def _round_up(x, m):
    return (x + m - 1) // m * m


def mlp_kernel(x_ref, w1_ref, b1_ref, w2_ref, b2_ref, w3_ref, b3_ref, o_ref):
    mxu = w1_ref.dtype  # bf16 by default (f32 if requested)
    # l1 -> tanh : MXU in mxu dtype, f32 accumulate, f32 bias + tanh (VPU/EUP)
    h1 = jnp.tanh(
        jnp.dot(x_ref[...].astype(mxu), w1_ref[...],
                preferred_element_type=jnp.float32)
        + b1_ref[...]
    )
    # dropout(p=0) == identity; l2 -> tanh
    h2 = jnp.tanh(
        jnp.dot(h1.astype(mxu), w2_ref[...],
                preferred_element_type=jnp.float32)
        + b2_ref[...]
    )
    # dropout(p=0) == identity; l3 (no activation), only the real O columns
    o_ref[...] = (
        jnp.dot(h2.astype(mxu), w3_ref[...],
                preferred_element_type=jnp.float32)
        + b3_ref[...]
    ).astype(o_ref.dtype)


@functools.partial(jax.jit, static_argnames=("mxu_dtype", "batch_tile"))
def mlp_forward(x, w1, b1, w2, b2, w3, b3, *,
                mxu_dtype=jnp.bfloat16, batch_tile=512):
    """x: [B, F]; w*: [in, out] (pre-transposed vs PyTorch); b*: [1, out].

    Returns [B, out_size] in float32.
    """
    B, F = x.shape
    H = w1.shape[1]
    O = w3.shape[1]
    Hp = _round_up(H, LANE)  # lane-dense hidden width (VMEM-only padding)

    # Batch tile: multiple of 8 sublanes; 512 keeps >=4 grid steps at B>=2048
    # (feeds both v7x TensorCores) and amortizes the ~0.35us/step overhead.
    TB = min(batch_tile, _round_up(B, 8))
    grid = (pl.cdiv(B, TB),)

    def pad2(a, rows, cols, dtype):
        return jnp.pad(
            a, ((0, rows - a.shape[0]), (0, cols - a.shape[1]))
        ).astype(dtype)

    # Weights: tiny, padded once, cast to the MXU input dtype.
    w1p = pad2(w1, F, Hp, mxu_dtype)
    w2p = pad2(w2, Hp, Hp, mxu_dtype)
    w3p = pad2(w3, Hp, O, mxu_dtype)
    # Biases stay f32 (added to the f32 accumulator); padded cols are 0 -> exact.
    b1p = pad2(b1, 1, Hp, jnp.float32)
    b2p = pad2(b2, 1, Hp, jnp.float32)
    b3p = b3.astype(jnp.float32)

    # Constant block index -> fetched once, VMEM-resident across the grid.
    resident = lambda shape: pl.BlockSpec(shape, lambda i: (0, 0))

    return pl.pallas_call(
        mlp_kernel,
        out_shape=jax.ShapeDtypeStruct((B, O), jnp.float32),
        grid=grid,
        in_specs=[
            pl.BlockSpec((TB, F), lambda i: (i, 0)),   # x: unpadded, batch-tiled
            resident((F, Hp)), resident((1, Hp)),      # l1
            resident((Hp, Hp)), resident((1, Hp)),     # l2
            resident((Hp, O)), resident((1, O)),       # l3
        ],
        out_specs=pl.BlockSpec((TB, O), lambda i: (i, 0)),  # unpadded output
        compiler_params=pltpu.CompilerParams(
            dimension_semantics=("parallel",)),
    )(x, w1p, b1p, w2p, b2p, w3p, b3p)


def _reference(x, w1, b1, w2, b2, w3, b3, mxu_dtype=jnp.bfloat16):
    c = lambda a: a.astype(mxu_dtype)
    h1 = jnp.tanh(jnp.dot(c(x), c(w1), preferred_element_type=jnp.float32) + b1)
    h2 = jnp.tanh(jnp.dot(c(h1), c(w2), preferred_element_type=jnp.float32) + b2)
    return jnp.dot(c(h2), c(w3), preferred_element_type=jnp.float32) + b3


if __name__ == "__main__":
    # Shapes implied by the module: feature_number -> 50 -> 50 -> out_size
    batch = 8
    feature_number = 32
    hidden = 50
    out_size = 8

    key = jax.random.PRNGKey(0)
    ks = jax.random.split(key, 8)

    # MLP.init uses uniform(-1, 1); weights stored as [in, out] (transpose of
    # PyTorch's [out, in]) so the kernel computes x @ W + b.
    x = jax.random.normal(ks[0], (batch, feature_number), dtype=jnp.float32)
    w1 = jax.random.uniform(ks[1], (feature_number, hidden), minval=-1.0, maxval=1.0)
    b1 = jax.random.uniform(ks[2], (1, hidden), minval=-1.0, maxval=1.0)
    w2 = jax.random.uniform(ks[3], (hidden, hidden), minval=-1.0, maxval=1.0)
    b2 = jax.random.uniform(ks[4], (1, hidden), minval=-1.0, maxval=1.0)
    w3 = jax.random.uniform(ks[5], (hidden, out_size), minval=-1.0, maxval=1.0)
    b3 = jax.random.uniform(ks[6], (1, out_size), minval=-1.0, maxval=1.0)

    # --- default bf16-MXU path, small batch (single grid step) ---
    out = jax.block_until_ready(mlp_forward(x, w1, b1, w2, b2, w3, b3))
    ref = _reference(x, w1, b1, w2, b2, w3, b3)
    assert out.shape == (batch, out_size)
    assert jnp.allclose(out, ref, atol=2e-2, rtol=2e-2), "bf16 mismatch vs reference"

    # --- exact f32-MXU path ---
    out32 = jax.block_until_ready(
        mlp_forward(x, w1, b1, w2, b2, w3, b3, mxu_dtype=jnp.float32))
    ref32 = _reference(x, w1, b1, w2, b2, w3, b3, mxu_dtype=jnp.float32)
    assert jnp.allclose(out32, ref32, atol=1e-4, rtol=1e-4), "f32 mismatch vs reference"

    # --- larger batch: 4-step parallel grid (feeds both v7x TensorCores) ---
    big_b = 2048
    xb = jax.random.normal(ks[7], (big_b, feature_number), dtype=jnp.float32)
    out_big = jax.block_until_ready(mlp_forward(xb, w1, b1, w2, b2, w3, b3))
    ref_big = _reference(xb, w1, b1, w2, b2, w3, b3)
    assert out_big.shape == (big_b, out_size)
    assert jnp.allclose(out_big, ref_big, atol=2e-2, rtol=2e-2), "tiled bf16 mismatch"

    # --- x already bf16: also halves input HBM streaming bytes ---
    out_bf16_in = jax.block_until_ready(
        mlp_forward(xb.astype(jnp.bfloat16), w1, b1, w2, b2, w3, b3))
    assert jnp.allclose(out_bf16_in, ref_big, atol=2e-2, rtol=2e-2), "bf16-input mismatch"

    print("KERNEL_OK")
</pallas_src>

<mosaic_0001>
module attributes {stable_mosaic.version = 11 : i64} {
  func.func @mlp_kernel(%arg0: i32, %arg1: memref<8x32xf32, #tpu.memory_space<vmem>>, %arg2: memref<32x128xbf16, #tpu.memory_space<vmem>>, %arg3: memref<1x128xf32, #tpu.memory_space<vmem>>, %arg4: memref<128x128xbf16, #tpu.memory_space<vmem>>, %arg5: memref<1x128xf32, #tpu.memory_space<vmem>>, %arg6: memref<128x8xbf16, #tpu.memory_space<vmem>>, %arg7: memref<1x8xf32, #tpu.memory_space<vmem>>, %arg8: memref<8x8xf32, #tpu.memory_space<vmem>>) attributes {dimension_semantics = [#tpu.dimension_semantics<parallel>], iteration_bounds = array<i64: 1>, scalar_prefetch = 0 : i64, scratch_operands = 0 : i64, tpu.core_type = #tpu.core_type<tc>, window_params = [{transform_indices = @transform_0, window_bounds = array<i64: 8, 32>}, {pipeline_mode = #tpu.pipeline_mode<synchronous>, transform_indices = @transform_1, window_bounds = array<i64: 32, 128>}, {pipeline_mode = #tpu.pipeline_mode<synchronous>, transform_indices = @transform_2, window_bounds = array<i64: 1, 128>}, {pipeline_mode = #tpu.pipeline_mode<synchronous>, transform_indices = @transform_3, window_bounds = array<i64: 128, 128>}, {pipeline_mode = #tpu.pipeline_mode<synchronous>, transform_indices = @transform_4, window_bounds = array<i64: 1, 128>}, {pipeline_mode = #tpu.pipeline_mode<synchronous>, transform_indices = @transform_5, window_bounds = array<i64: 128, 8>}, {pipeline_mode = #tpu.pipeline_mode<synchronous>, transform_indices = @transform_6, window_bounds = array<i64: 1, 8>}, {transform_indices = @transform_7, window_bounds = array<i64: 8, 8>}]} {
    %c0 = arith.constant 0 : index
    %c0_0 = arith.constant 0 : index
    %0 = vector.load %arg1[%c0, %c0_0] : memref<8x32xf32, #tpu.memory_space<vmem>>, vector<8x32xf32>
    %1 = arith.truncf %0 : vector<8x32xf32> to vector<8x32xbf16>
    %c0_1 = arith.constant 0 : index
    %c0_2 = arith.constant 0 : index
    %2 = vector.load %arg2[%c0_1, %c0_2] : memref<32x128xbf16, #tpu.memory_space<vmem>>, vector<32x128xbf16>
    %cst = arith.constant dense<0.000000e+00> : vector<8x128xf32>
    %3 = tpu.matmul %1, %2, %cst {dimension_numbers = #tpu.dot_dimension_numbers<[1], [0], [0], [1], [0, 0, 1, 1], [], []>} : vector<8x32xbf16>, vector<32x128xbf16>, vector<8x128xf32> -> vector<8x128xf32>
    %c0_3 = arith.constant 0 : index
    %c0_4 = arith.constant 0 : index
    %4 = vector.load %arg3[%c0_3, %c0_4] : memref<1x128xf32, #tpu.memory_space<vmem>>, vector<1x128xf32>
    %5 = vector.broadcast %4 : vector<1x128xf32> to vector<8x128xf32>
    %6 = arith.addf %3, %5 : vector<8x128xf32>
    %7 = math.tanh %6 : vector<8x128xf32>
    %8 = arith.truncf %7 : vector<8x128xf32> to vector<8x128xbf16>
    %c0_5 = arith.constant 0 : index
    %c0_6 = arith.constant 0 : index
    %9 = vector.load %arg4[%c0_5, %c0_6] : memref<128x128xbf16, #tpu.memory_space<vmem>>, vector<128x128xbf16>
    %cst_7 = arith.constant dense<0.000000e+00> : vector<8x128xf32>
    %10 = tpu.matmul %8, %9, %cst_7 {dimension_numbers = #tpu.dot_dimension_numbers<[1], [0], [0], [1], [0, 0, 1, 1], [], []>} : vector<8x128xbf16>, vector<128x128xbf16>, vector<8x128xf32> -> vector<8x128xf32>
    %c0_8 = arith.constant 0 : index
    %c0_9 = arith.constant 0 : index
    %11 = vector.load %arg5[%c0_8, %c0_9] : memref<1x128xf32, #tpu.memory_space<vmem>>, vector<1x128xf32>
    %12 = vector.broadcast %11 : vector<1x128xf32> to vector<8x128xf32>
    %13 = arith.addf %10, %12 : vector<8x128xf32>
    %14 = math.tanh %13 : vector<8x128xf32>
    %15 = arith.truncf %14 : vector<8x128xf32> to vector<8x128xbf16>
    %c0_10 = arith.constant 0 : index
    %c0_11 = arith.constant 0 : index
    %16 = vector.load %arg6[%c0_10, %c0_11] : memref<128x8xbf16, #tpu.memory_space<vmem>>, vector<128x8xbf16>
    %cst_12 = arith.constant dense<0.000000e+00> : vector<8x8xf32>
    %17 = tpu.matmul %15, %16, %cst_12 {dimension_numbers = #tpu.dot_dimension_numbers<[1], [0], [0], [1], [0, 0, 1, 1], [], []>} : vector<8x128xbf16>, vector<128x8xbf16>, vector<8x8xf32> -> vector<8x8xf32>
    %c0_13 = arith.constant 0 : index
    %c0_14 = arith.constant 0 : index
    %18 = vector.load %arg7[%c0_13, %c0_14] : memref<1x8xf32, #tpu.memory_space<vmem>>, vector<1x8xf32>
    %19 = vector.broadcast %18 : vector<1x8xf32> to vector<8x8xf32>
    %20 = arith.addf %17, %19 : vector<8x8xf32>
    %c0_15 = arith.constant 0 : index
    %c0_16 = arith.constant 0 : index
    %21 = vector.load %arg8[%c0_15, %c0_16] : memref<8x8xf32, #tpu.memory_space<vmem>>, vector<8x8xf32>
    tpu.vector_store %arg8[%c0_15, %c0_16], %20 {strides = array<i32>} : memref<8x8xf32, #tpu.memory_space<vmem>>, vector<8x8xf32>,
    return
  }
  func.func @transform_0(%arg0: i32) -> (i32, i32) {
    %c0_i32 = arith.constant 0 : i32
    %c0_i32_0 = arith.constant 0 : i32
    return %arg0, %c0_i32 : i32, i32
  }
  func.func @transform_1(%arg0: i32) -> (i32, i32) {
    %c0_i32 = arith.constant 0 : i32
    %c0_i32_0 = arith.constant 0 : i32
    %c0_i32_1 = arith.constant 0 : i32
    return %c0_i32, %c0_i32_0 : i32, i32
  }
  func.func @transform_2(%arg0: i32) -> (i32, i32) {
    %c0_i32 = arith.constant 0 : i32
    %c0_i32_0 = arith.constant 0 : i32
    %c0_i32_1 = arith.constant 0 : i32
    return %c0_i32, %c0_i32_0 : i32, i32
  }
  func.func @transform_3(%arg0: i32) -> (i32, i32) {
    %c0_i32 = arith.constant 0 : i32
    %c0_i32_0 = arith.constant 0 : i32
    %c0_i32_1 = arith.constant 0 : i32
    return %c0_i32, %c0_i32_0 : i32, i32
  }
  func.func @transform_4(%arg0: i32) -> (i32, i32) {
    %c0_i32 = arith.constant 0 : i32
    %c0_i32_0 = arith.constant 0 : i32
    %c0_i32_1 = arith.constant 0 : i32
    return %c0_i32, %c0_i32_0 : i32, i32
  }
  func.func @transform_5(%arg0: i32) -> (i32, i32) {
    %c0_i32 = arith.constant 0 : i32
    %c0_i32_0 = arith.constant 0 : i32
    %c0_i32_1 = arith.constant 0 : i32
    return %c0_i32, %c0_i32_0 : i32, i32
  }
  func.func @transform_6(%arg0: i32) -> (i32, i32) {
    %c0_i32 = arith.constant 0 : i32
    %c0_i32_0 = arith.constant 0 : i32
    %c0_i32_1 = arith.constant 0 : i32
    return %c0_i32, %c0_i32_0 : i32, i32
  }
  func.func @transform_7(%arg0: i32) -> (i32, i32) {
    %c0_i32 = arith.constant 0 : i32
    %c0_i32_0 = arith.constant 0 : i32
    return %arg0, %c0_i32 : i32, i32
  }
}

</mosaic_0001>

<bundles_post_ra>
// kernel: mlp_forward.1
= control target key start
LH: loop header
LB: loop body
LE: loop exit
PB: predicated region body
PF: predicated region fallthrough
CT: control target
= control target key end

     0   :  { %v479_v1 = vmov 0.0   ;;  %vm480_vm0 = vmmov 0   ;;  %vm53_vm1 = vcmask 261120   ;;  %s624_s0 = inlined_call_operand.vmem [shape: f32[8,32], index: 0, kind: input, shape index: {}]   ;;  %s625_s1 = inlined_call_operand.vmem [shape: bf16[32,128], index: 1, kind: input, shape index: {}]   ;;  %s626_s2 = inlined_call_operand.vmem [shape: f32[1,128], index: 2, kind: input, shape index: {}]   ;;  %s627_s3 = inlined_call_operand.vmem [shape: bf16[128,128], index: 3, kind: input, shape index: {}]   ;;  %s628_s4 = inlined_call_operand.vmem [shape: f32[1,128], index: 4, kind: input, shape index: {}]   ;;  %s629_s5 = inlined_call_operand.vmem [shape: bf16[128,8], index: 5, kind: input, shape index: {}]   ;;  %s630_s6 = inlined_call_operand.vmem [shape: f32[1,8], index: 6, kind: input, shape index: {}]   ;;  %s631_s7 = inlined_call_operand.hbm [shape: f32[8,8], index: 7, kind: output, shape index: {}]  }
   0x1   :  { %v433_v0 = vld [vmem:[%s625_s1] sm:$0xff]   ;;  %382 = vmatprep.subr.bf16.mxu0 %v479_v1  ;;  %v434_v2 = vld [vmem:[%s625_s1 + $0x8] sm:$0xff]   ;;  %390 = vmatprep.subr.bf16.mxu1 %v479_v1  ;;  %v437_v7 = vld [vmem:[%s627_s3 + $0x10] sm:$0xff]  }
   0x2   :  { %383 = vmatpush3.bf16.msra.mxu0 %v433_v0  ;;  %386 = vmatprep.mubr.msk.bf16.mxu0 %vm480_vm0, %v479_v1  ;;  %v28_v3 = vld [vmem:[%s624_s0] sm:$0xff]  ;;  %v436_v6 = vld [vmem:[%s627_s3 + $0x8] sm:$0xff]   ;;  %v438_v8 = vld [vmem:[%s627_s3 + $0x18] sm:$0xff]  }
   0x3   :  { %384 = vmatprep.subr.bf16.mxu0 %v479_v1  ;;  %v435_v4 = vld [vmem:[%s627_s3] sm:$0xff]   ;;  %406 = vmatprep.mubr.msk.bf16.mxu1 %vm480_vm0, %v479_v1  ;;  %v29_v5 = vpack.c.bf16 %v28_v3, %v28_v3 }
   0x4   :  { %391 = vmatpush3.bf16.msra.mxu1 %v435_v4 }
   0x5   :  { %392 = vmatprep.subr.bf16.mxu1 %v479_v1 }
   0x6   :  { %385 = vmatpush3.bf16.msra.mxu0 %v434_v2 }
   0x7   :  { %410 = vmatprep.subr.bf16.mxu0 %v479_v1 }
   0x8   :  { %393 = vmatpush3.bf16.msra.mxu1 %v436_v6 }
   0x9   :  { %387 = vmatmul.mubr.msk.bf16.vlgmr.msra.gmra.mrb[0].mxu0 %vm53_vm1, %v29_v5  ;;  %394 = vmatprep.subr.bf16.mxu1 %v479_v1 }
   0xa   :  { %426 = vmatprep.mubr.msk.bf16.mxu0 %vm480_vm0, %v479_v1 }
   0xc   :  { %395 = vmatpush3.bf16.msra.mxu1 %v437_v7 }
   0xd   :  { %396 = vmatprep.subr.bf16.mxu1 %v479_v1 }
   0xe   :  { %12 = vsyncpa [#allocation3], 0  ;;  %v439_v9 = vld [vmem:[%s627_s3 + $0x20] sm:$0xff]   ;;  %v440_v10 = vld [vmem:[%s627_s3 + $0x28] sm:$0xff]   ;;  %s481_s16 = smov [#allocation2]   ;;  %vm323_vm2 = vcmask 64512  }
   0xf   :  { %v441_v11 = vld [vmem:[%s627_s3 + $0x30] sm:$0xff]   ;;  %v442_v12 = vld [vmem:[%s627_s3 + $0x38] sm:$0xff]   ;;  %v443_v13 = vld [vmem:[%s629_s5] sm:$0xff]  }
  0x10   :  { %397 = vmatpush3.bf16.msra.mxu1 %v438_v8  ;;  %411 = vmatpush3.bf16.msra.mxu0 %v443_v13  ;;  %v444_v14 = vld [vmem:[%s629_s5 + $0x8] sm:$0xff]   ;;  %v445_v15 = vld [vmem:[%s629_s5 + $0x10] sm:$0xff]   ;;  %v446_v16 = vld [vmem:[%s629_s5 + $0x18] sm:$0xff]  }
  0x11   :  { %398 = vmatprep.subr.bf16.mxu1 %v479_v1  ;;  %412 = vmatprep.subr.bf16.mxu0 %v479_v1  ;;  %v339_v17 = vld [vmem:[%s626_s2] ss:$0 sm:$0xff]  ;;  %v448_v26 = vld [vmem:[%s629_s5 + $0x28] sm:$0xff]   ;;  %v449_v27 = vld [vmem:[%s629_s5 + $0x30] sm:$0xff]  }
  0x12   :  { %v447_v25 = vld [vmem:[%s629_s5 + $0x20] sm:$0xff]   ;;  %v450_v28 = vld [vmem:[%s629_s5 + $0x38] sm:$0xff]   ;;  %s331_s5 = sshll.u32 %s481_s16, 4  ;;  %s332_s5 = int_to_ptr.vmem [resolvable:$true] %s331_s5 }
  0x13   :  { %v343_v29 = vld [vmem:[%s628_s4] ss:$0 sm:$0xff]  ;;  %s455_s4 = scalar_lea.vmem %s332_s5, 128  ;;  %p460_p1 = scmp.lt.s32.totalorder %s332_s5, %s332_s5 }
  0x14   :  { %399 = vmatpush3.bf16.msra.mxu1 %v439_v9  ;;  %413 = vmatpush3.bf16.msra.mxu0 %v444_v14  ;;  %v352_v37 = vld [vmem:[%s630_s6] ss:$0 sm:$0xff]  ;;  %p456_p0 = scmp.ne.s32.totalorder %s332_s5, %s455_s4  ;;  %p461_p2 = scmp.lt.s32.totalorder %s455_s4, %s455_s4 }
  0x15   :  { %400 = vmatprep.subr.bf16.mxu1 %v479_v1  ;;  %414 = vmatprep.subr.bf16.mxu0 %v479_v1 }
  0x16   :  { %p462_p3 = por %p461_p2, %p460_p1 }
  0x18   :  { %401 = vmatpush3.bf16.msra.mxu1 %v440_v10  ;;  %415 = vmatpush3.bf16.msra.mxu0 %v445_v15  ;;  %p463_p4 = pnand %p462_p3, %p456_p0 }
  0x19   :  { %402 = vmatprep.subr.bf16.mxu1 %v479_v1  ;;  %416 = vmatprep.subr.bf16.mxu0 %v479_v1 }
  0x1c   :  { %403 = vmatpush3.bf16.msra.mxu1 %v441_v11  ;;  %417 = vmatpush3.bf16.msra.mxu0 %v446_v16 }
  0x1d   :  { %404 = vmatprep.subr.bf16.mxu1 %v479_v1  ;;  %418 = vmatprep.subr.bf16.mxu0 %v479_v1 }
  0x20   :  { %405 = vmatpush3.bf16.msra.mxu1 %v442_v12  ;;  %419 = vmatpush3.bf16.msra.mxu0 %v447_v25 }
  0x21   :  { %420 = vmatprep.subr.bf16.mxu0 %v479_v1 }
  0x24   :  { %421 = vmatpush3.bf16.msra.mxu0 %v448_v26 }
  0x25   :  { %422 = vmatprep.subr.bf16.mxu0 %v479_v1 }
  0x28   :  { %423 = vmatpush3.bf16.msra.mxu0 %v449_v27 }
  0x29   :  { %424 = vmatprep.subr.bf16.mxu0 %v479_v1 }
  0x2c   :  { %425 = vmatpush3.bf16.msra.mxu0 %v450_v28 }
  0xdc   :  { %v91_v18 = vpop.f32.mrb[0].mxu0 }
  0xdd   :  { %v92_v19 = vadd.f32 %v339_v17, %v91_v18  ;;  %v388_v20 = vpop.f32.mrb[1].mxu0 }
  0xde   :  { %v94_v21 = vpop.f32.mrb[2].mxu0 }
  0xdf   :  { %451 = vtanh.f32 %v92_v19  ;;  %v389_v22 = vpop.f32.mrb[3].mxu0 }
  0xe9   :  { %v452_v23 = vpop.eup %451 }
  0xea   :  { %v98_v24 = vpack.c.bf16 %v452_v23, %v452_v23 }
  0xec   :  { %407 = vmatmul.mubr.bf16.vlgmr.msra.gmra.mrb[0].mxu1 %v98_v24 }
 0x1bf   :  { %v204_v30 = vpop.f32.mrb[0].mxu1 }
 0x1c0   :  { %v205_v31 = vadd.f32 %v343_v29, %v204_v30  ;;  %v408_v32 = vpop.f32.mrb[1].mxu1 }
 0x1c1   :  { %v207_v33 = vpop.f32.mrb[2].mxu1 }
 0x1c2   :  { %453 = vtanh.f32 %v205_v31  ;;  %v409_v34 = vpop.f32.mrb[3].mxu1 }
 0x1cc   :  { %v454_v35 = vpop.eup %453 }
 0x1cd   :  { %v211_v36 = vpack.c.bf16 %v454_v35, %v454_v35 }
 0x1cf   :  { %427 = vmatmul.mubr.bf16.vlgmr.msra.gmra.mrb[4].mxu0 %v211_v36 }
 0x2a2   :  { %v317_v38 = vpop.f32.mrb[4].mxu0 }
 0x2a3   :  { %v318_v39 = vadd.f32 %v352_v37, %v317_v38  ;;  %v428_v40 = vpop.f32.mrb[5].mxu0 }
 0x2a4   :  { %v320_v41 = vpop.f32.mrb[6].mxu0 }
 0x2a5   :  { %v429_v42 = vpop.f32.mrb[7].mxu0  ;;  %324 = vst.msk [vmem:[#allocation2] sm:$0xff] %vm323_vm2, %v318_v39 }
 0x2a6   :  { %466 = shalt.err (!%p463_p4)
}
 0x2a7   :  { %s467_s6 = scalar_lea.hbm %s631_s7, 128 }
 0x2a8   :  { %p468_p5 = scmp.ne.s32.totalorder %s631_s7, %s467_s6  ;;  %p471_p6 = scmp.lt.u32.totalorder %s467_s6, %s631_s7 }
 0x2aa   :  { %p473_p7 = pnand %p471_p6, %p468_p5 }
 0x2ac   :  { %476 = shalt.err (!%p473_p7)
}
 0x2ad   :  { %334 = dma.vmem_to_hbm [thread:$0]  %s332_s5, 128, %s631_s7, [#allocation3]  }
 0x2ae   :  { %477 = dma.done.wait [#allocation3], 128  }
 0x2af   :  { %478 = vsyncadd [#allocation3], 4294967168 }
 0x2b0   :  { %338 = vsyncpa [#allocation3], 1 }

</bundles_post_ra>
